<compile_context>
chip_gen: v7x
topology: tpu7x:2x2x1
jax: 0.10.0
libtpu: 0.0.40
codegen_flags: <defaults>
</compile_context>

<pallas_src>
import jax
import jax.numpy as jnp
from jax.experimental import pallas as pl
from jax.experimental.pallas import tpu as pltpu


def _round_up(x, m):
    return ((x + m - 1) // m) * m


def _gather_kernel(idx_ref, table_ref, out_ref):
    """Pure row gather from the fused (n_objects, out_dim) table.

    idx_ref:   (N_pad,) int32, SMEM   — all indices (scalar-prefetched)
    table_ref: (n_objects, out_dim)   — fused table = Emb @ W.T (+ b), VMEM
    out_ref:   (tile, out_dim)        — output rows for this grid step
    """
    tile = out_ref.shape[0]
    n_objects = table_ref.shape[0]
    base = pl.program_id(0) * tile

    def gather_row(r, carry):
        oid = idx_ref[base + r]
        # nn.Embedding raises on out-of-range indices; VMEM refs have no
        # bounds check, so clamp to avoid reading garbage / stale VMEM.
        oid = jnp.clip(oid, 0, n_objects - 1)
        out_ref[pl.ds(r, 1), :] = table_ref[pl.ds(oid, 1), :]
        return carry

    if tile <= 32:
        # Small static tile: fully unroll at trace time.
        for r in range(tile):
            gather_row(r, 0)
    else:
        jax.lax.fori_loop(0, tile, gather_row, 0, unroll=8)


def embedding_w_forward(o_idxs, emb_table, weight, bias=None, *, max_tile=1024):
    """EmbeddingW.forward. o_idxs: int array of any shape.
    Returns o_idxs.shape + (out_dimension,), float32."""
    n_objects, emb_dim = emb_table.shape
    out_dim, in_dim = weight.shape
    assert in_dim == emb_dim

    # --- Fuse the linear projection into the table (plain JAX / XLA, once). ---
    fused = jnp.dot(emb_table.astype(jnp.float32), weight.T.astype(jnp.float32),
                    preferred_element_type=jnp.float32)
    if bias is not None:
        fused = fused + bias.reshape(1, out_dim).astype(jnp.float32)
    fused = fused.astype(jnp.float32)

    orig_shape = o_idxs.shape
    idx = o_idxs.reshape(-1).astype(jnp.int32)
    n = idx.shape[0]

    # --- Row-tile selection: big tile (amortise per-step overhead), multiple
    # of 8 sublanes, and >= 2 grid steps when possible so ("parallel",) can
    # shard across both v7x TensorCores. ---
    tile = min(max_tile, _round_up(n, 8))
    if _round_up(n, tile) // tile < 2 and n > 8:
        tile = max(8, _round_up(n // 2, 8))
    n_pad = _round_up(n, tile)
    if n_pad != n:
        idx = jnp.concatenate([idx, jnp.zeros((n_pad - n,), jnp.int32)])

    # --- VMEM budgeting: fused table is double-buffered by the pipeline even
    # though its block index never changes; raise the scoped limit only when
    # the 32 MiB default would not cover it. ---
    fused_bytes = n_objects * out_dim * 4
    vmem_need = 2 * fused_bytes + 2 * tile * out_dim * 4 + (1 << 20)
    cp_kwargs = dict(dimension_semantics=("parallel",))
    if vmem_need > (32 << 20):
        cp_kwargs["vmem_limit_bytes"] = int(min(vmem_need, 100 << 20))

    grid = (n_pad // tile,)
    out = pl.pallas_call(
        _gather_kernel,
        out_shape=jax.ShapeDtypeStruct((n_pad, out_dim), jnp.float32),
        grid_spec=pltpu.PrefetchScalarGridSpec(
            # Indices live in SMEM (no per-step VMEM buffer pair) and are
            # readable from the kernel body and index_maps alike.
            num_scalar_prefetch=1,
            grid=grid,
            in_specs=[
                # Fused table: resident VMEM constant for every grid step.
                pl.BlockSpec((n_objects, out_dim), lambda i, idx_ref: (0, 0)),
            ],
            out_specs=pl.BlockSpec((tile, out_dim), lambda i, idx_ref: (i, 0)),
        ),
        compiler_params=pltpu.CompilerParams(**cp_kwargs),
    )(idx, fused)

    if n_pad != n:
        out = out[:n]
    return out.reshape(*orig_shape, out_dim)


def _reference(o_idxs, emb_table, weight, bias=None):
    ref = emb_table[o_idxs] @ weight.T
    if bias is not None:
        ref = ref + bias
    return ref


if __name__ == "__main__":
    # Module hyper-params (small, consistent with the forward pass).
    n_objects = 64
    embedding_dim = 32
    out_dimension = 16

    key = jax.random.PRNGKey(0)
    k_emb, k_w, k_b, k_idx1, k_idx2 = jax.random.split(key, 5)

    # Deterministic synthetic parameters (not a checkpoint load).
    emb_table = jax.random.normal(k_emb, (n_objects, embedding_dim),
                                  dtype=jnp.float32)
    bound = 1.0 / (embedding_dim ** 0.5)
    weight = jax.random.uniform(k_w, (out_dimension, embedding_dim),
                                minval=-bound, maxval=bound, dtype=jnp.float32)
    bias = jax.random.uniform(k_b, (out_dimension,),
                              minval=-bound, maxval=bound, dtype=jnp.float32)

    ok = True

    # Case 1: default EmbeddingW (use_bias=False), small batch (2, 8)
    # -> unrolled-tile path, 2 grid steps.
    o_idxs = jax.random.randint(k_idx1, (2, 8), 0, n_objects, dtype=jnp.int32)
    fwd = jax.jit(lambda i: embedding_w_forward(i, emb_table, weight, None))
    y = jax.block_until_ready(fwd(o_idxs))
    ref = _reference(o_idxs, emb_table, weight, None)
    ok &= y.shape == (2, 8, out_dimension)
    ok &= bool(jnp.allclose(y, ref, atol=1e-5, rtol=1e-5))

    # Case 2: larger flat batch -> fori_loop tile path + remainder padding.
    o_idxs2 = jax.random.randint(k_idx2, (4, 50), 0, n_objects, dtype=jnp.int32)
    y2 = jax.block_until_ready(fwd(o_idxs2))
    ref2 = _reference(o_idxs2, emb_table, weight, None)
    ok &= y2.shape == (4, 50, out_dimension)
    ok &= bool(jnp.allclose(y2, ref2, atol=1e-5, rtol=1e-5))

    # Case 3: use_bias=True variant.
    fwd_b = jax.jit(lambda i: embedding_w_forward(i, emb_table, weight, bias))
    y3 = jax.block_until_ready(fwd_b(o_idxs))
    ref3 = _reference(o_idxs, emb_table, weight, bias)
    ok &= bool(jnp.allclose(y3, ref3, atol=1e-5, rtol=1e-5))

    assert ok
    print("KERNEL_OK")
</pallas_src>

<mosaic_0001>
module attributes {stable_mosaic.version = 11 : i64} {
  func.func @_gather_kernel(%arg0: i32, %arg1: memref<16xi32, #tpu.memory_space<smem>>, %arg2: memref<64x16xf32, #tpu.memory_space<vmem>>, %arg3: memref<8x16xf32, #tpu.memory_space<vmem>>) attributes {dimension_semantics = [#tpu.dimension_semantics<parallel>], iteration_bounds = array<i64: 2>, scalar_prefetch = 1 : i64, scratch_operands = 0 : i64, tpu.core_type = #tpu.core_type<tc>, window_params = [{pipeline_mode = #tpu.pipeline_mode<synchronous>, transform_indices = @transform_0, window_bounds = array<i64: 64, 16>}, {transform_indices = @transform_1, window_bounds = array<i64: 8, 16>}]} {
    %c8_i32 = arith.constant 8 : i32
    %0 = arith.muli %arg0, %c8_i32 : i32
    %c0_i32 = arith.constant 0 : i32
    %1 = arith.addi %0, %c0_i32 : i32
    %2 = arith.index_cast %1 : i32 to index
    %3 = memref.load %arg1[%2] : memref<16xi32, #tpu.memory_space<smem>>
    %c0_i32_0 = arith.constant 0 : i32
    %c63_i32 = arith.constant 63 : i32
    %4 = arith.maxsi %c0_i32_0, %3 : i32
    %5 = arith.minsi %c63_i32, %4 : i32
    %6 = arith.index_cast %5 : i32 to index
    %c0 = arith.constant 0 : index
    %7 = vector.load %arg2[%6, %c0] : memref<64x16xf32, #tpu.memory_space<vmem>>, vector<1x16xf32>
    %c0_1 = arith.constant 0 : index
    %c0_2 = arith.constant 0 : index
    %8 = vector.load %arg3[%c0_1, %c0_2] : memref<8x16xf32, #tpu.memory_space<vmem>>, vector<1x16xf32>
    tpu.vector_store %arg3[%c0_1, %c0_2], %7 {strides = array<i32>} : memref<8x16xf32, #tpu.memory_space<vmem>>, vector<1x16xf32>,
    %c1_i32 = arith.constant 1 : i32
    %9 = arith.addi %0, %c1_i32 : i32
    %10 = arith.index_cast %9 : i32 to index
    %11 = memref.load %arg1[%10] : memref<16xi32, #tpu.memory_space<smem>>
    %c0_i32_3 = arith.constant 0 : i32
    %c63_i32_4 = arith.constant 63 : i32
    %12 = arith.maxsi %c0_i32_3, %11 : i32
    %13 = arith.minsi %c63_i32_4, %12 : i32
    %14 = arith.index_cast %13 : i32 to index
    %c0_5 = arith.constant 0 : index
    %15 = vector.load %arg2[%14, %c0_5] : memref<64x16xf32, #tpu.memory_space<vmem>>, vector<1x16xf32>
    %c1 = arith.constant 1 : index
    %c0_6 = arith.constant 0 : index
    %16 = vector.load %arg3[%c1, %c0_6] : memref<8x16xf32, #tpu.memory_space<vmem>>, vector<1x16xf32>
    tpu.vector_store %arg3[%c1, %c0_6], %15 {strides = array<i32>} : memref<8x16xf32, #tpu.memory_space<vmem>>, vector<1x16xf32>,
    %c2_i32 = arith.constant 2 : i32
    %17 = arith.addi %0, %c2_i32 : i32
    %18 = arith.index_cast %17 : i32 to index
    %19 = memref.load %arg1[%18] : memref<16xi32, #tpu.memory_space<smem>>
    %c0_i32_7 = arith.constant 0 : i32
    %c63_i32_8 = arith.constant 63 : i32
    %20 = arith.maxsi %c0_i32_7, %19 : i32
    %21 = arith.minsi %c63_i32_8, %20 : i32
    %22 = arith.index_cast %21 : i32 to index
    %c0_9 = arith.constant 0 : index
    %23 = vector.load %arg2[%22, %c0_9] : memref<64x16xf32, #tpu.memory_space<vmem>>, vector<1x16xf32>
    %c2 = arith.constant 2 : index
    %c0_10 = arith.constant 0 : index
    %24 = vector.load %arg3[%c2, %c0_10] : memref<8x16xf32, #tpu.memory_space<vmem>>, vector<1x16xf32>
    tpu.vector_store %arg3[%c2, %c0_10], %23 {strides = array<i32>} : memref<8x16xf32, #tpu.memory_space<vmem>>, vector<1x16xf32>,
    %c3_i32 = arith.constant 3 : i32
    %25 = arith.addi %0, %c3_i32 : i32
    %26 = arith.index_cast %25 : i32 to index
    %27 = memref.load %arg1[%26] : memref<16xi32, #tpu.memory_space<smem>>
    %c0_i32_11 = arith.constant 0 : i32
    %c63_i32_12 = arith.constant 63 : i32
    %28 = arith.maxsi %c0_i32_11, %27 : i32
    %29 = arith.minsi %c63_i32_12, %28 : i32
    %30 = arith.index_cast %29 : i32 to index
    %c0_13 = arith.constant 0 : index
    %31 = vector.load %arg2[%30, %c0_13] : memref<64x16xf32, #tpu.memory_space<vmem>>, vector<1x16xf32>
    %c3 = arith.constant 3 : index
    %c0_14 = arith.constant 0 : index
    %32 = vector.load %arg3[%c3, %c0_14] : memref<8x16xf32, #tpu.memory_space<vmem>>, vector<1x16xf32>
    tpu.vector_store %arg3[%c3, %c0_14], %31 {strides = array<i32>} : memref<8x16xf32, #tpu.memory_space<vmem>>, vector<1x16xf32>,
    %c4_i32 = arith.constant 4 : i32
    %33 = arith.addi %0, %c4_i32 : i32
    %34 = arith.index_cast %33 : i32 to index
    %35 = memref.load %arg1[%34] : memref<16xi32, #tpu.memory_space<smem>>
    %c0_i32_15 = arith.constant 0 : i32
    %c63_i32_16 = arith.constant 63 : i32
    %36 = arith.maxsi %c0_i32_15, %35 : i32
    %37 = arith.minsi %c63_i32_16, %36 : i32
    %38 = arith.index_cast %37 : i32 to index
    %c0_17 = arith.constant 0 : index
    %39 = vector.load %arg2[%38, %c0_17] : memref<64x16xf32, #tpu.memory_space<vmem>>, vector<1x16xf32>
    %c4 = arith.constant 4 : index
    %c0_18 = arith.constant 0 : index
    %40 = vector.load %arg3[%c4, %c0_18] : memref<8x16xf32, #tpu.memory_space<vmem>>, vector<1x16xf32>
    tpu.vector_store %arg3[%c4, %c0_18], %39 {strides = array<i32>} : memref<8x16xf32, #tpu.memory_space<vmem>>, vector<1x16xf32>,
    %c5_i32 = arith.constant 5 : i32
    %41 = arith.addi %0, %c5_i32 : i32
    %42 = arith.index_cast %41 : i32 to index
    %43 = memref.load %arg1[%42] : memref<16xi32, #tpu.memory_space<smem>>
    %c0_i32_19 = arith.constant 0 : i32
    %c63_i32_20 = arith.constant 63 : i32
    %44 = arith.maxsi %c0_i32_19, %43 : i32
    %45 = arith.minsi %c63_i32_20, %44 : i32
    %46 = arith.index_cast %45 : i32 to index
    %c0_21 = arith.constant 0 : index
    %47 = vector.load %arg2[%46, %c0_21] : memref<64x16xf32, #tpu.memory_space<vmem>>, vector<1x16xf32>
    %c5 = arith.constant 5 : index
    %c0_22 = arith.constant 0 : index
    %48 = vector.load %arg3[%c5, %c0_22] : memref<8x16xf32, #tpu.memory_space<vmem>>, vector<1x16xf32>
    tpu.vector_store %arg3[%c5, %c0_22], %47 {strides = array<i32>} : memref<8x16xf32, #tpu.memory_space<vmem>>, vector<1x16xf32>,
    %c6_i32 = arith.constant 6 : i32
    %49 = arith.addi %0, %c6_i32 : i32
    %50 = arith.index_cast %49 : i32 to index
    %51 = memref.load %arg1[%50] : memref<16xi32, #tpu.memory_space<smem>>
    %c0_i32_23 = arith.constant 0 : i32
    %c63_i32_24 = arith.constant 63 : i32
    %52 = arith.maxsi %c0_i32_23, %51 : i32
    %53 = arith.minsi %c63_i32_24, %52 : i32
    %54 = arith.index_cast %53 : i32 to index
    %c0_25 = arith.constant 0 : index
    %55 = vector.load %arg2[%54, %c0_25] : memref<64x16xf32, #tpu.memory_space<vmem>>, vector<1x16xf32>
    %c6 = arith.constant 6 : index
    %c0_26 = arith.constant 0 : index
    %56 = vector.load %arg3[%c6, %c0_26] : memref<8x16xf32, #tpu.memory_space<vmem>>, vector<1x16xf32>
    tpu.vector_store %arg3[%c6, %c0_26], %55 {strides = array<i32>} : memref<8x16xf32, #tpu.memory_space<vmem>>, vector<1x16xf32>,
    %c7_i32 = arith.constant 7 : i32
    %57 = arith.addi %0, %c7_i32 : i32
    %58 = arith.index_cast %57 : i32 to index
    %59 = memref.load %arg1[%58] : memref<16xi32, #tpu.memory_space<smem>>
    %c0_i32_27 = arith.constant 0 : i32
    %c63_i32_28 = arith.constant 63 : i32
    %60 = arith.maxsi %c0_i32_27, %59 : i32
    %61 = arith.minsi %c63_i32_28, %60 : i32
    %62 = arith.index_cast %61 : i32 to index
    %c0_29 = arith.constant 0 : index
    %63 = vector.load %arg2[%62, %c0_29] : memref<64x16xf32, #tpu.memory_space<vmem>>, vector<1x16xf32>
    %c7 = arith.constant 7 : index
    %c0_30 = arith.constant 0 : index
    %64 = vector.load %arg3[%c7, %c0_30] : memref<8x16xf32, #tpu.memory_space<vmem>>, vector<1x16xf32>
    tpu.vector_store %arg3[%c7, %c0_30], %63 {strides = array<i32>} : memref<8x16xf32, #tpu.memory_space<vmem>>, vector<1x16xf32>,
    return
  }
  func.func @transform_0(%arg0: i32, %arg1: memref<16xi32, #tpu.memory_space<smem>>) -> (i32, i32) {
    %c0_i32 = arith.constant 0 : i32
    %c0_i32_0 = arith.constant 0 : i32
    %c0_i32_1 = arith.constant 0 : i32
    return %c0_i32, %c0_i32_0 : i32, i32
  }
  func.func @transform_1(%arg0: i32, %arg1: memref<16xi32, #tpu.memory_space<smem>>) -> (i32, i32) {
    %c0_i32 = arith.constant 0 : i32
    %c0_i32_0 = arith.constant 0 : i32
    return %arg0, %c0_i32 : i32, i32
  }
}

</mosaic_0001>

<bundles_post_ra>
// kernel: _lambda_.1
= control target key start
LH: loop header
LB: loop body
LE: loop exit
PB: predicated region body
PF: predicated region fallthrough
CT: control target
= control target key end

     0   :  { %s702_s0 = inlined_call_operand.vmem [shape: s32[16], index: 0, kind: input, shape index: {}]   ;;  %s703_s1 = inlined_call_operand.hbm [shape: f32[64,16], index: 1, kind: input, shape index: {}]   ;;  %s704_s2 = inlined_call_operand.hbm [shape: f32[16,16], index: 2, kind: output, shape index: {}]  }
   0x1   :  { %s7_s11 = sshll.u32 %s702_s0, 4  ;;  %s8_s11 = int_to_ptr.vmem [resolvable:$true] %s7_s11 }
   0x2   :  { %s391_s12 = scalar_lea.vmem %s8_s11, 16  ;;  %p396_p1 = scmp.lt.s32.totalorder %s8_s11, %s8_s11 }
   0x3   :  { %p392_p0 = scmp.ne.s32.totalorder %s8_s11, %s391_s12  ;;  %p397_p2 = scmp.lt.s32.totalorder %s391_s12, %s391_s12 }
   0x5   :  { %p398_p3 = por %p397_p2, %p396_p1 }
   0x7   :  { %p399_p4 = pnand %p398_p3, %p392_p0 }
   0x9   :  { %402 = shalt.err (!%p399_p4)  }
   0xa   :  { %s501_s13 = smov [#allocation3]  }
   0xb   :  { %10 = dma.vmem_to_smem %s8_s11, 16, %s501_s13, [#allocation2] }
   0xc   :  { %475 = dma.done.wait [#allocation2], 16 }
   0xd   :  { %476 = vsyncadd [#allocation2], 4294967280 }
   0xe   :  { %12 = sfence }
   0xf   :  { %13 = vsyncpa [#allocation5], 0 }
  0x10   :  { %14 = vsyncpa [#allocation6], 0 }
  0x11   :  { %16 = vsyncpa [#allocation6 + $0x1], 0  ;;  %s524_s14 = smov 0   ;;  %s526_s15 = smov 0  }
  0x12   :  { %s528_s0 = smov 0   ;;  %s530_s16 = smov 0  }
  0x13 LB: > { %s545_s17 = sadd.s32 4294967295, %s499_s16   ;;  %s271_s18 = sadd.s32 4294967294, %s499_s16   ;;  %s499_s16 = sphi %s530_s16, %s720_s16   ;;  %s495_s0 = sphi %s528_s0, %s719_s0   ;;  %s491_s15 = sphi %s526_s15, %s718_s15   ;;  %s487_s14 = sphi %s524_s14, %s717_s14  }
  0x14   : > { %s549_s19 = sadd.s32 1, %s499_s16   ;;  %s50_s20 = sadd.s32 1, %s495_s0 }
  0x15   : > { %s47_s21 = ssub.s32 %s499_s16, %s549_s19  ;;  %p60_p5 = scmp.ne.s32.totalorder %s495_s0, %s491_s15 }
  0x16   : > { %p48_p6 = scmp.eq.s32.totalorder %s47_s21, 0  ;;  %p61_p7 = scmp.eq.s32.totalorder %s545_s17, 1 }
  0x17   : > { %p66_p8 = scmp.ne.s32.totalorder %s491_s15, %s487_s14  ;;  %p67_p9 = scmp.eq.s32.totalorder %s271_s18, 1 }
  0x18   : > { %s560_s22 = scalar_select %p48_p6, %s495_s0, %s50_s20  }
  0x19   : > { %p562_p10 = por %p61_p7, %p60_p5  ;;  %p566_p11 = por %p67_p9, %p66_p8 }
  0x1a   : > { %p272_p12 = scmp.ge.s32.totalorder %s499_s16, 1  ;;  %p74_p13 = scmp.lt.s32.totalorder %s499_s16, 3 }
  0x1b   : > { %s708_s23 = scalar_select %p562_p10, 1, 0 }
  0x1c   : > { %s709_s24 = scalar_select %p566_p11, 1, 0 }
  0x1d   : > { %p705_p0 = scmp.eq.s32.totalorder %s545_s17, 0  ;;  %p573_p1 = pnand %p272_p12, %p74_p13 }
  0x1e   : > { %s502_s26 = smov [#allocation4]   ;;  %s403_s3 = scalar_lea.hbm %s703_s1, 1024 }
  0x1f   : > { %s710_s25 = scalar_select %p573_p1, 1, 0 }
  0x20   : > { %s86_s27 = sshll.u32 %s502_s26, 4  ;;  %p344_p2 = pneg %p573_p1  ;;  %s87_s27 = int_to_ptr.vmem [resolvable:$true] %s86_s27 }
  0x21   : > { %p404_p4 = scmp.ne.s32.totalorder %s703_s1, %s403_s3  ;;  %p410_p8 = scmp.lt.u32.totalorder %s403_s3, %s703_s1 }
  0x22   : > { %p581_p3 = pnand %p705_p0, %p344_p2 }
  0x24   : > { %p405_p5 = pneg %p581_p3 }
  0x26   : > { %p406_p6 = pnand %p405_p5, %p404_p4 }
  0x28   : > { %p407_p7 = pneg %p406_p6 }
  0x2a   : > { %p412_p9 = pnand %p410_p8, %p407_p7 }
  0x2c   : > { %415 = shalt.err (!%p412_p9)
}
  0x2d   : > { %s416_s8 = scalar_lea.vmem %s87_s27, 1024  ;;  %p424_p0 = scmp.lt.s32.totalorder %s87_s27, %s87_s27 }
  0x2e   : > { %p417_p12 = scmp.ne.s32.totalorder %s87_s27, %s416_s8  ;;  %p425_p11 = scmp.lt.s32.totalorder %s416_s8, %s416_s8 }
  0x30   : > { %p419_p13 = pnand %p417_p12, %p405_p5  ;;  %p426_p10 = por %p425_p11, %p424_p0 }
  0x32   : > { %p420_p2 = pneg %p419_p13 }
  0x34   : > { %p427_p1 = pnand %p426_p10, %p420_p2 }
  0x36   : > { %430 = shalt.err (!%p427_p1)
}
  0x37   : > { %s503_s9 = smov 128   ;;  %s504_s10 = smov 8  }
  0x38   : > { %347 = dma.hbm_to_vmem [thread:$0]  (!%p581_p3), %s703_s1, 1024, %s87_s27, [#allocation5], %s503_s9, %s503_s9, %s504_s10  }
  0x39   : > { %p712_p4 = scmp.ne.s32.totalorder %s710_s25, 0 }
  0x3a   : > { %p713_p6 = scmp.eq.s32.totalorder (!%p712_p4), %s545_s17, 0 }
  0x3b   : > { %102 = sbr.rel (%p712_p4) target bundleno = 123 (0x7b), region = 24 }
  0x42   : > { %478 = dma.done.wait (%p713_p6), [#allocation5], 1024   ;;  %p714_p5 = pmov %p713_p6 }
  0x43   : > { %s114_s13 = sand.u32 1, %s491_s15   ;;  %s609_s18 = sshll.u32 %s545_s17, 3  ;;  %vm125_vm0 = vcmask 122880  }
  0x44   : > { %480 = vsyncadd (%p714_p5), [#allocation5], 4294966272  ;;  %s276_s20 = sshll.u32 %s114_s13, 3  ;;  %s118_s21 = sld [smem:[#allocation3 + %s609_s18]] }
  0x45   : > { %s127_s25 = sadd.s32 1, %s609_s18  ;;  %s136_s26 = sadd.s32 2, %s609_s18 }
  0x46   : > { %s128_s27 = sld [smem:[#allocation3 + %s127_s25]]  ;;  %s145_s29 = sadd.s32 3, %s609_s18 }
  0x47   : > { %s137_s28 = sld [smem:[#allocation3 + %s136_s26]]  ;;  %s154_s30 = sadd.s32 4, %s609_s18 }
  0x48   : > { %s618_s3 = sld [smem:[#allocation3 + %s145_s29]]  ;;  %s163_s5 = sadd.s32 5, %s609_s18 }
  0x49   : > { %s620_s4 = sld [smem:[#allocation3 + %s154_s30]]  ;;  %s172_s6 = sadd.s32 6, %s609_s18 }
  0x4a   : > { %p119_p10 = scmp.gt.s32.totalorder %s118_s21, 0  ;;  %p278_p11 = scmp.lt.s32.totalorder %s118_s21, 63 }
  0x4b   : > { %s624_s8 = scalar_lea.vmem [#allocation7], %s276_s20  ;;  %s173_s25 = sld [smem:[#allocation3 + %s172_s6]] }
  0x4c   : > { %s722_s21 = smov (!%p119_p10, %s118_s21), 0  ;;  %p129_p0 = scmp.gt.s32.totalorder %s128_s27, 0 }
  0x4d   : > { %p283_p1 = scmp.lt.s32.totalorder %s128_s27, 63  ;;  %s724_s21 = smov (!%p278_p11, %s722_s21), 63 }
  0x4e   : > { %s726_s27 = smov (!%p129_p0, %s128_s27), 0  ;;  %p138_p3 = scmp.gt.s32.totalorder %s137_s28, 0 }
  0x4f   : > { %s123_s7 = scalar_lea.vmem [#allocation4], %s724_s21  ;;  %s728_s27 = smov (!%p283_p1, %s726_s27), 63 }
  0x50   : > { %v124_v0 = vld [vmem:[%s123_s7] sm:$0x1]  ;;  %s139_s9 = scalar_select %p138_p3, %s137_s28, 0 }
  0x51   : > { %126 = vst.msk [vmem:[%s624_s8] sm:$0x1] %vm125_vm0, %v124_v0  ;;  %p288_p7 = scmp.lt.s32.totalorder %s137_s28, 63  ;;  %s133_s10 = scalar_lea.vmem [#allocation4], %s728_s27 }
  0x52   : > { %v134_v1 = vld [vmem:[%s133_s10] sm:$0x1]  ;;  %p147_p8 = scmp.gt.s32.totalorder %s618_s3, 0  ;;  %p293_p9 = scmp.lt.s32.totalorder %s618_s3, 63 }
  0x53   : > { %135 = vst.msk [vmem:[%s624_s8 + $0x1] sm:$0x1] %vm125_vm0, %v134_v1  ;;  %s730_s9 = smov (!%p288_p7, %s139_s9), 63  ;;  %p156_p12 = scmp.gt.s32.totalorder %s620_s4, 0 }
  0x54   : > { %s732_s3 = smov (!%p147_p8, %s618_s3), 0  ;;  %s142_s11 = scalar_lea.vmem [#allocation4], %s730_s9 }
  0x55   : > { %v143_v2 = vld [vmem:[%s142_s11] sm:$0x1]  ;;  %s734_s3 = smov (!%p293_p9, %s732_s3), 63  ;;  %p298_p13 = scmp.lt.s32.totalorder %s620_s4, 63 }
  0x56   : > { %144 = vst.msk [vmem:[%s624_s8 + $0x2] sm:$0x1] %vm125_vm0, %v143_v2  ;;  %s157_s12 = scalar_select %p156_p12, %s620_s4, 0 }
  0x57   : > { %s151_s20 = scalar_lea.vmem [#allocation4], %s734_s3  ;;  %s164_s21 = sld [smem:[#allocation3 + %s163_s5]] }
  0x58   : > { %v152_v3 = vld [vmem:[%s151_s20] sm:$0x1]  ;;  %s736_s12 = smov (!%p298_p13, %s157_s12), 63  ;;  %s181_s26 = sadd.s32 7, %s609_s18 }
  0x59   : > { %153 = vst.msk [vmem:[%s624_s8 + $0x3] sm:$0x1] %vm125_vm0, %v152_v3  ;;  %s160_s27 = scalar_lea.vmem [#allocation4], %s736_s12  ;;  %s182_s28 = sld [smem:[#allocation3 + %s181_s26]] }
  0x5a   : > { %v161_v4 = vld [vmem:[%s160_s27] sm:$0x1]  ;;  %s319_s29 = sshll.u32 %s545_s17, 7  ;;  %p174_p6 = scmp.gt.s32.totalorder %s173_s25, 0 }
  0x5b   : > { %162 = vst.msk [vmem:[%s624_s8 + $0x4] sm:$0x1] %vm125_vm0, %v161_v4  ;;  %p308_p5 = scmp.lt.s32.totalorder %s173_s25, 63  ;;  %s204_s30 = sshll.u32 %s624_s8, 4  ;;  %s658_s30 = int_to_ptr.vmem [resolvable:$true] %s204_s30 }
  0x5c   : > { %s740_s25 = smov (!%p174_p6, %s173_s25), 0  ;;  %s656_s5 = scalar_lea.hbm %s704_s2, %s319_s29 }
  0x5d   : > { %p165_p2 = scmp.gt.s32.totalorder %s164_s21, 0  ;;  %p303_p4 = scmp.lt.s32.totalorder %s164_s21, 63 }
  0x5e   : > { %s744_s25 = smov (!%p308_p5, %s740_s25), 63  ;;  %s191_s7 = scalar_lea.sflag [#allocation6], %s114_s13 }
  0x5f   : > { %s738_s21 = smov (!%p165_p2, %s164_s21), 0  ;;  %p183_p10 = scmp.gt.s32.totalorder %s182_s28, 0 }
  0x60   : > { %s742_s21 = smov (!%p303_p4, %s738_s21), 63  ;;  %p313_p11 = scmp.lt.s32.totalorder %s182_s28, 63 }
  0x61   : > { %s169_s18 = scalar_lea.vmem [#allocation4], %s742_s21  ;;  %s178_s17 = scalar_lea.vmem [#allocation4], %s744_s25 }
  0x62   : > { %v170_v5 = vld [vmem:[%s169_s18] sm:$0x1]  ;;  %s746_s28 = smov (!%p183_p10, %s182_s28), 0  ;;  %s431_s9 = scalar_lea.vmem %s658_s30, 128 }
  0x63   : > { %171 = vst.msk [vmem:[%s624_s8 + $0x5] sm:$0x1] %vm125_vm0, %v170_v5  ;;  %v179_v6 = vld [vmem:[%s178_s17] sm:$0x1]  ;;  %s748_s28 = smov (!%p313_p11, %s746_s28), 63  ;;  %p432_p0 = scmp.ne.s32.totalorder %s658_s30, %s431_s9 }
  0x64   : > { %180 = vst.msk [vmem:[%s624_s8 + $0x6] sm:$0x1] %vm125_vm0, %v179_v6  ;;  %s187_s6 = scalar_lea.vmem [#allocation4], %s748_s28  ;;  %p715_p1 = scmp.ne.s32.totalorder %s708_s23, 0 }
  0x65   : > { %v188_v7 = vld [vmem:[%s187_s6] sm:$0x1]  ;;  %s505_s10 = smov [#allocation7]  }
  0x66   : > { %189 = vst.msk [vmem:[%s624_s8 + $0x7] sm:$0x1] %vm125_vm0, %v188_v7  ;;  %p433_p3 = pnand %p432_p0, %p715_p1  ;;  %s435_s11 = sshll.u32 %s505_s10, 4  ;;  %s436_s11 = int_to_ptr.vmem [resolvable:$false] %s435_s11 }
  0x67   : > { %s437_s12 = scalar_lea.vmem %s436_s11, 256  ;;  %p438_p8 = scmp.lt.s32.totalorder %s658_s30, %s436_s11 }
  0x68   : > { %p434_p7 = pneg %p433_p3  ;;  %p439_p9 = scmp.lt.s32.totalorder %s437_s12, %s431_s9 }
  0x6a   : > { %p440_p12 = por %p439_p9, %p438_p8 }
  0x6c   : > { %p441_p13 = pnand %p440_p12, %p434_p7 }
  0x6e   : > { %444 = shalt.err (!%p441_p13)
}
  0x6f   : > { %s445_s13 = scalar_lea.hbm %s656_s5, 128  ;;  %s449_s21 = scalar_lea.hbm %s704_s2, 256 }
  0x70   : > { %p446_p2 = scmp.ne.s32.totalorder %s656_s5, %s445_s13  ;;  %p450_p5 = scmp.lt.u32.totalorder %s656_s5, %s704_s2 }
  0x71   : > { %p451_p10 = scmp.lt.u32.totalorder %s449_s21, %s445_s13  ;;  %p453_p0 = scmp.lt.u32.totalorder %s445_s13, %s656_s5 }
  0x72   : > { %p447_p4 = pnand %p446_p2, %p715_p1 }
  0x73   : > { %p452_p11 = por %p451_p10, %p450_p5 }
  0x74   : > { %p448_p6 = pneg %p447_p4 }
  0x75   : > { %p454_p3 = por %p453_p0, %p452_p11 }
  0x77   : > { %p455_p7 = pnand %p454_p3, %p448_p6 }
  0x79   : > { %458 = shalt.err (!%p455_p7)
}
  0x7a   : > { %342 = dma.vmem_to_hbm [thread:$0]  (%p715_p1), %s658_s30, 128, %s656_s5, %s191_s7  }
  0x7b PF: > { %p354_p8 = scmp.ge.s32.totalorder %s499_s16, 2  ;;  %s216_s27 = sand.u32 1, %s487_s14  }
  0x7c   : > { %p716_p9 = scmp.ne.s32.totalorder %s709_s24, 0  ;;  %s217_s28 = scalar_lea.sflag [#allocation6], %s216_s27 }
  0x7e   : > { %p349_p12 = pnand %p354_p8, %p716_p9 }
  0x80   : > { %482 = dma.done.wait (!%p349_p12), %s217_s28, 128  }
  0x81   : > { %484 = vsyncadd (!%p349_p12), %s217_s28, 4294967168  ;;  %p19_p13 = scmp.ge.s32.totalorder %s549_s19, 4   ;;  %s717_s14 = smov %s491_s15 }
  0x82   : > { %s718_s15 = smov %s495_s0  ;;  %s719_s0 = smov %s560_s22 }
  0x83   : > { %s720_s16 = smov %s549_s19  ;;  %21 = sbr.rel (!%p19_p13) target bundleno = 19 (0x13), region = 69 }
  0x8a   :  { %222 = vsyncpa [#allocation5], 1 }
  0x8b   :  { %224 = vsyncpa [#allocation5 + $0x1], 1 }
  0x8c   :  { %225 = vsyncpa [#allocation6], 1 }
  0x8d   :  { %227 = vsyncpa [#allocation6 + $0x1], 1 }

</bundles_post_ra>
